<compile_context>
chip_gen: v7x
topology: tpu7x:2x2x1
jax: 0.10.0
libtpu: 0.0.40
codegen_flags: <defaults>
</compile_context>

<pallas_src>
import jax
import jax.numpy as jnp
from jax import lax
from jax.experimental import pallas as pl
from jax.experimental.pallas import tpu as pltpu


def lstm_recurrence_kernel(gx_ref, whh_ref, wfc_ref, y_ref, h_ref, c_ref):
    """One sequence chunk of the LSTM recurrence + final fc.

    gx_ref  : VMEM (chunk_packed, 8, batch) f32 -- precomputed x @ W_ih^T gate
              pre-activations; sublanes 0..3 = step 2p (gates i,f,g,o),
              sublanes 4..7 = step 2p+1.
    whh_ref : SMEM (4,) f32 -- recurrent weights W_hh[:, 0], gate order i,f,g,o.
    wfc_ref : SMEM (1,) f32 -- fc weight.
    y_ref   : VMEM (1, batch) f32 -- output, written on the last chunk only.
    h_ref, c_ref : VMEM (1, batch) f32 scratch -- state carried across chunks.
    """
    chunk = pl.program_id(0)

    @pl.when(chunk == 0)
    def _():
        h_ref[...] = jnp.zeros_like(h_ref)
        c_ref[...] = jnp.zeros_like(c_ref)

    chunk_packed = gx_ref.shape[0]

    # Recurrent weights as sreg scalars (splat into VPU ops for free).
    u_i = whh_ref[0]
    u_f = whh_ref[1]
    u_g = whh_ref[2]
    u_o = whh_ref[3]

    def step(p, carry):
        h, c = carry                       # each (1, batch)
        tile = gx_ref[p]                   # (8, batch): 2 timesteps of gate pre-acts

        def cell(r0, h, c):
            # Row slices depend only on the tile load -> off the h/c critical chain.
            gi = tile[r0 + 0:r0 + 1, :] + u_i * h
            gf = tile[r0 + 1:r0 + 2, :] + u_f * h
            gg = tile[r0 + 2:r0 + 3, :] + u_g * h
            go = tile[r0 + 3:r0 + 4, :] + u_o * h
            c_new = jax.nn.sigmoid(gf) * c + jax.nn.sigmoid(gi) * jnp.tanh(gg)
            h_new = jax.nn.sigmoid(go) * jnp.tanh(c_new)
            return h_new, c_new

        h, c = cell(0, h, c)
        h, c = cell(4, h, c)
        return (h, c)

    h0 = h_ref[...]
    c0 = c_ref[...]
    h_fin, c_fin = lax.fori_loop(0, chunk_packed, step, (h0, c0),
                                 unroll=min(8, chunk_packed))
    h_ref[...] = h_fin
    c_ref[...] = c_fin

    @pl.when(chunk == pl.num_programs(0) - 1)
    def _():
        # fc: Linear(hidden=1 -> 1, no bias)
        y_ref[...] = h_fin * wfc_ref[0]


def lstmsubmodel_forward(xt, w_ih, w_hh, w_fc, *, chunk_steps=512):
    """xt: (seq_len, batch, 2) f32 -> y: (batch, 1) f32 (matches the PyTorch module)."""
    S, B, indim = xt.shape
    assert indim == 2
    xt = xt.astype(jnp.float32)
    w_ih = w_ih.astype(jnp.float32)            # (4, 2), PyTorch gate order i,f,g,o
    w_hh = w_hh.astype(jnp.float32)            # (4, 1)
    w_fc = w_fc.astype(jnp.float32)            # (1, 1)

    # Timesteps per grid step: even (2 steps per 8-sublane tile), capped for tiny S.
    chunk_steps = max(2, min(chunk_steps, ((S + 1) // 2) * 2))
    n_chunks = -(-S // chunk_steps)
    S_pad = n_chunks * chunk_steps
    pad = S_pad - S

    # Non-recurrent gate pre-activations, fused with the batch->lane transpose in
    # one XLA pass over x; the kernel then only does the serial recurrence.
    gx = jnp.einsum('sbi,gi->sgb', xt, w_ih)                   # (S, 4, B)

    # Front-pad with exact no-op steps: i pre-act = -1e4 -> sigmoid == 0, so the
    # initial h = c = 0 is preserved through the padding.
    if pad > 0:
        pad_blk = jnp.zeros((pad, 4, B), jnp.float32).at[:, 0, :].set(-1e4)
        gx = jnp.concatenate([pad_blk, gx], axis=0)            # (S_pad, 4, B)

    # Pack 2 timesteps per (8, lane) tile: (S_pad, 4, B) -> (S_pad//2, 8, B).
    gx = gx.reshape(S_pad // 2, 8, B)
    chunk_packed = chunk_steps // 2

    whh = w_hh.reshape(4)          # SMEM scalars
    wfc = w_fc.reshape(1)          # SMEM scalar

    y = pl.pallas_call(
        lstm_recurrence_kernel,
        out_shape=jax.ShapeDtypeStruct((1, B), jnp.float32),
        grid_spec=pltpu.PrefetchScalarGridSpec(
            num_scalar_prefetch=0,
            grid=(n_chunks,),
            in_specs=[
                pl.BlockSpec((chunk_packed, 8, B), lambda c: (c, 0, 0)),  # gx chunk
                pl.BlockSpec(memory_space=pltpu.MemorySpace.SMEM),        # w_hh (4,)
                pl.BlockSpec(memory_space=pltpu.MemorySpace.SMEM),        # w_fc (1,)
            ],
            out_specs=pl.BlockSpec((1, B), lambda c: (0, 0)),
            scratch_shapes=[
                pltpu.VMEM((1, B), jnp.float32),   # h carry
                pltpu.VMEM((1, B), jnp.float32),   # c carry
            ],
        ),
        compiler_params=pltpu.CompilerParams(
            dimension_semantics=("arbitrary",),
        ),
    )(gx, whh, wfc)

    return y.reshape(B, 1)


def reference_forward(xt, w_ih, w_hh, w_fc):
    """Pure-JAX reference replicating torch.nn.LSTM (no bias) + Linear (no bias)."""
    S, B, _ = xt.shape
    h = jnp.zeros((B, 1), jnp.float32)
    c = jnp.zeros((B, 1), jnp.float32)
    for t in range(S):
        gates = xt[t] @ w_ih.T + h @ w_hh.T            # (B, 4), gate order i,f,g,o
        i = jax.nn.sigmoid(gates[:, 0:1])
        f = jax.nn.sigmoid(gates[:, 1:2])
        g = jnp.tanh(gates[:, 2:3])
        o = jax.nn.sigmoid(gates[:, 3:4])
        c = f * c + i * g
        h = o * jnp.tanh(c)
    return h @ w_fc.T                                  # (B, 1)


if __name__ == "__main__":
    seq_len, batch, indim, hidden = 8, 4, 2, 1

    key = jax.random.PRNGKey(0)
    kx, k1, k2, k3 = jax.random.split(key, 4)

    # PyTorch LSTM init is U(-1/sqrt(h), 1/sqrt(h)); h=1 -> U(-1, 1).
    w_ih = jax.random.uniform(k1, (4 * hidden, indim), jnp.float32, minval=-1.0, maxval=1.0)
    w_hh = jax.random.uniform(k2, (4 * hidden, hidden), jnp.float32, minval=-1.0, maxval=1.0)
    w_fc = jax.random.uniform(k3, (1, hidden), jnp.float32, minval=-1.0, maxval=1.0)

    xt = jax.random.normal(kx, (seq_len, batch, indim), jnp.float32)

    y = lstmsubmodel_forward(xt, w_ih, w_hh, w_fc)
    y = jax.block_until_ready(y)

    y_ref = reference_forward(xt, w_ih, w_hh, w_fc)
    assert y.shape == (batch, 1)
    assert jnp.allclose(y, y_ref, atol=1e-5, rtol=1e-5), (y, y_ref)

    print("KERNEL_OK")
</pallas_src>

<mosaic_0001>
module attributes {stable_mosaic.version = 11 : i64} {
  func.func @lstm_recurrence_kernel(%arg0: i32, %arg1: memref<4x8x4xf32, #tpu.memory_space<vmem>>, %arg2: memref<4xf32, #tpu.memory_space<smem>>, %arg3: memref<1xf32, #tpu.memory_space<smem>>, %arg4: memref<1x4xf32, #tpu.memory_space<vmem>>, %arg5: memref<1x4xf32, #tpu.memory_space<vmem>>, %arg6: memref<1x4xf32, #tpu.memory_space<vmem>>) attributes {dimension_semantics = [#tpu.dimension_semantics<arbitrary>], iteration_bounds = array<i64: 1>, scalar_prefetch = 0 : i64, scratch_operands = 2 : i64, tpu.core_type = #tpu.core_type<tc>, window_params = [{transform_indices = @transform_0, window_bounds = array<i64: 4, 8, 4>}, {transform_indices = @transform_1, window_bounds = array<i64: 4>}, {transform_indices = @transform_2, window_bounds = array<i64: 1>}, {pipeline_mode = #tpu.pipeline_mode<synchronous>, transform_indices = @transform_3, window_bounds = array<i64: 1, 4>}]} {
    %c0_i32 = arith.constant 0 : i32
    %0 = arith.cmpi eq, %arg0, %c0_i32 : i32
    %1 = arith.extui %0 : i1 to i32
    %c0_i32_0 = arith.constant 0 : i32
    %2 = arith.cmpi ne, %1, %c0_i32_0 : i32
    scf.if %2 {
      %cst_43 = arith.constant 0.000000e+00 : f32
      %322 = vector.broadcast %cst_43 : f32 to vector<1x4xf32>
      %c0_44 = arith.constant 0 : index
      %c0_45 = arith.constant 0 : index
      %323 = vector.load %arg5[%c0_44, %c0_45] : memref<1x4xf32, #tpu.memory_space<vmem>>, vector<1x4xf32>
      tpu.vector_store %arg5[%c0_44, %c0_45], %322 {strides = array<i32>} : memref<1x4xf32, #tpu.memory_space<vmem>>, vector<1x4xf32>,
      %cst_46 = arith.constant 0.000000e+00 : f32
      %324 = vector.broadcast %cst_46 : f32 to vector<1x4xf32>
      %c0_47 = arith.constant 0 : index
      %c0_48 = arith.constant 0 : index
      %325 = vector.load %arg6[%c0_47, %c0_48] : memref<1x4xf32, #tpu.memory_space<vmem>>, vector<1x4xf32>
      tpu.vector_store %arg6[%c0_47, %c0_48], %324 {strides = array<i32>} : memref<1x4xf32, #tpu.memory_space<vmem>>, vector<1x4xf32>,
    } else {
    }
    %c0 = arith.constant 0 : index
    %3 = memref.load %arg2[%c0] : memref<4xf32, #tpu.memory_space<smem>>
    %c1 = arith.constant 1 : index
    %4 = memref.load %arg2[%c1] : memref<4xf32, #tpu.memory_space<smem>>
    %c2 = arith.constant 2 : index
    %5 = memref.load %arg2[%c2] : memref<4xf32, #tpu.memory_space<smem>>
    %c3 = arith.constant 3 : index
    %6 = memref.load %arg2[%c3] : memref<4xf32, #tpu.memory_space<smem>>
    %c0_1 = arith.constant 0 : index
    %c0_2 = arith.constant 0 : index
    %7 = vector.load %arg5[%c0_1, %c0_2] : memref<1x4xf32, #tpu.memory_space<vmem>>, vector<1x4xf32>
    %c0_3 = arith.constant 0 : index
    %c0_4 = arith.constant 0 : index
    %8 = vector.load %arg6[%c0_3, %c0_4] : memref<1x4xf32, #tpu.memory_space<vmem>>, vector<1x4xf32>
    %c0_i32_5 = arith.constant 0 : i32
    %9 = arith.index_cast %c0_i32_5 : i32 to index
    %c0_6 = arith.constant 0 : index
    %c0_7 = arith.constant 0 : index
    %10 = vector.load %arg1[%9, %c0_6, %c0_7] : memref<4x8x4xf32, #tpu.memory_space<vmem>>, vector<1x8x4xf32>
    %11 = vector.shape_cast %10 : vector<1x8x4xf32> to vector<8x4xf32>
    %12 = vector.extract_strided_slice %11 {offsets = [0, 0], sizes = [1, 4], strides = [1, 1]} : vector<8x4xf32> to vector<1x4xf32>
    %13 = vector.broadcast %3 : f32 to vector<1x4xf32>
    %14 = arith.mulf %13, %7 : vector<1x4xf32>
    %15 = arith.addf %12, %14 : vector<1x4xf32>
    %16 = vector.extract_strided_slice %11 {offsets = [1, 0], sizes = [1, 4], strides = [1, 1]} : vector<8x4xf32> to vector<1x4xf32>
    %17 = vector.broadcast %4 : f32 to vector<1x4xf32>
    %18 = arith.mulf %17, %7 : vector<1x4xf32>
    %19 = arith.addf %16, %18 : vector<1x4xf32>
    %20 = vector.extract_strided_slice %11 {offsets = [2, 0], sizes = [1, 4], strides = [1, 1]} : vector<8x4xf32> to vector<1x4xf32>
    %21 = vector.broadcast %5 : f32 to vector<1x4xf32>
    %22 = arith.mulf %21, %7 : vector<1x4xf32>
    %23 = arith.addf %20, %22 : vector<1x4xf32>
    %24 = vector.extract_strided_slice %11 {offsets = [3, 0], sizes = [1, 4], strides = [1, 1]} : vector<8x4xf32> to vector<1x4xf32>
    %25 = vector.broadcast %6 : f32 to vector<1x4xf32>
    %26 = arith.mulf %25, %7 : vector<1x4xf32>
    %27 = arith.addf %24, %26 : vector<1x4xf32>
    %28 = arith.negf %19 : vector<1x4xf32>
    %29 = math.exp %28 : vector<1x4xf32>
    %cst = arith.constant 1.000000e+00 : f32
    %30 = vector.broadcast %cst : f32 to vector<1x4xf32>
    %31 = arith.addf %30, %29 : vector<1x4xf32>
    %32 = arith.divf %30, %31 : vector<1x4xf32>
    %33 = arith.mulf %32, %8 : vector<1x4xf32>
    %34 = arith.negf %15 : vector<1x4xf32>
    %35 = math.exp %34 : vector<1x4xf32>
    %cst_8 = arith.constant 1.000000e+00 : f32
    %36 = vector.broadcast %cst_8 : f32 to vector<1x4xf32>
    %37 = arith.addf %36, %35 : vector<1x4xf32>
    %38 = arith.divf %36, %37 : vector<1x4xf32>
    %39 = math.tanh %23 : vector<1x4xf32>
    %40 = arith.mulf %38, %39 : vector<1x4xf32>
    %41 = arith.addf %33, %40 : vector<1x4xf32>
    %42 = arith.negf %27 : vector<1x4xf32>
    %43 = math.exp %42 : vector<1x4xf32>
    %cst_9 = arith.constant 1.000000e+00 : f32
    %44 = vector.broadcast %cst_9 : f32 to vector<1x4xf32>
    %45 = arith.addf %44, %43 : vector<1x4xf32>
    %46 = arith.divf %44, %45 : vector<1x4xf32>
    %47 = math.tanh %41 : vector<1x4xf32>
    %48 = arith.mulf %46, %47 : vector<1x4xf32>
    %49 = vector.extract_strided_slice %11 {offsets = [4, 0], sizes = [1, 4], strides = [1, 1]} : vector<8x4xf32> to vector<1x4xf32>
    %50 = vector.broadcast %3 : f32 to vector<1x4xf32>
    %51 = arith.mulf %50, %48 : vector<1x4xf32>
    %52 = arith.addf %49, %51 : vector<1x4xf32>
    %53 = vector.extract_strided_slice %11 {offsets = [5, 0], sizes = [1, 4], strides = [1, 1]} : vector<8x4xf32> to vector<1x4xf32>
    %54 = vector.broadcast %4 : f32 to vector<1x4xf32>
    %55 = arith.mulf %54, %48 : vector<1x4xf32>
    %56 = arith.addf %53, %55 : vector<1x4xf32>
    %57 = vector.extract_strided_slice %11 {offsets = [6, 0], sizes = [1, 4], strides = [1, 1]} : vector<8x4xf32> to vector<1x4xf32>
    %58 = vector.broadcast %5 : f32 to vector<1x4xf32>
    %59 = arith.mulf %58, %48 : vector<1x4xf32>
    %60 = arith.addf %57, %59 : vector<1x4xf32>
    %61 = vector.extract_strided_slice %11 {offsets = [7, 0], sizes = [1, 4], strides = [1, 1]} : vector<8x4xf32> to vector<1x4xf32>
    %62 = vector.broadcast %6 : f32 to vector<1x4xf32>
    %63 = arith.mulf %62, %48 : vector<1x4xf32>
    %64 = arith.addf %61, %63 : vector<1x4xf32>
    %65 = arith.negf %56 : vector<1x4xf32>
    %66 = math.exp %65 : vector<1x4xf32>
    %cst_10 = arith.constant 1.000000e+00 : f32
    %67 = vector.broadcast %cst_10 : f32 to vector<1x4xf32>
    %68 = arith.addf %67, %66 : vector<1x4xf32>
    %69 = arith.divf %67, %68 : vector<1x4xf32>
    %70 = arith.mulf %69, %41 : vector<1x4xf32>
    %71 = arith.negf %52 : vector<1x4xf32>
    %72 = math.exp %71 : vector<1x4xf32>
    %cst_11 = arith.constant 1.000000e+00 : f32
    %73 = vector.broadcast %cst_11 : f32 to vector<1x4xf32>
    %74 = arith.addf %73, %72 : vector<1x4xf32>
    %75 = arith.divf %73, %74 : vector<1x4xf32>
    %76 = math.tanh %60 : vector<1x4xf32>
    %77 = arith.mulf %75, %76 : vector<1x4xf32>
    %78 = arith.addf %70, %77 : vector<1x4xf32>
    %79 = arith.negf %64 : vector<1x4xf32>
    %80 = math.exp %79 : vector<1x4xf32>
    %cst_12 = arith.constant 1.000000e+00 : f32
    %81 = vector.broadcast %cst_12 : f32 to vector<1x4xf32>
    %82 = arith.addf %81, %80 : vector<1x4xf32>
    %83 = arith.divf %81, %82 : vector<1x4xf32>
    %84 = math.tanh %78 : vector<1x4xf32>
    %85 = arith.mulf %83, %84 : vector<1x4xf32>
    %c1_i32 = arith.constant 1 : i32
    %86 = arith.index_cast %c1_i32 : i32 to index
    %c0_13 = arith.constant 0 : index
    %c0_14 = arith.constant 0 : index
    %87 = vector.load %arg1[%86, %c0_13, %c0_14] : memref<4x8x4xf32, #tpu.memory_space<vmem>>, vector<1x8x4xf32>
    %88 = vector.shape_cast %87 : vector<1x8x4xf32> to vector<8x4xf32>
    %89 = vector.extract_strided_slice %88 {offsets = [0, 0], sizes = [1, 4], strides = [1, 1]} : vector<8x4xf32> to vector<1x4xf32>
    %90 = vector.broadcast %3 : f32 to vector<1x4xf32>
    %91 = arith.mulf %90, %85 : vector<1x4xf32>
    %92 = arith.addf %89, %91 : vector<1x4xf32>
    %93 = vector.extract_strided_slice %88 {offsets = [1, 0], sizes = [1, 4], strides = [1, 1]} : vector<8x4xf32> to vector<1x4xf32>
    %94 = vector.broadcast %4 : f32 to vector<1x4xf32>
    %95 = arith.mulf %94, %85 : vector<1x4xf32>
    %96 = arith.addf %93, %95 : vector<1x4xf32>
    %97 = vector.extract_strided_slice %88 {offsets = [2, 0], sizes = [1, 4], strides = [1, 1]} : vector<8x4xf32> to vector<1x4xf32>
    %98 = vector.broadcast %5 : f32 to vector<1x4xf32>
    %99 = arith.mulf %98, %85 : vector<1x4xf32>
    %100 = arith.addf %97, %99 : vector<1x4xf32>
    %101 = vector.extract_strided_slice %88 {offsets = [3, 0], sizes = [1, 4], strides = [1, 1]} : vector<8x4xf32> to vector<1x4xf32>
    %102 = vector.broadcast %6 : f32 to vector<1x4xf32>
    %103 = arith.mulf %102, %85 : vector<1x4xf32>
    %104 = arith.addf %101, %103 : vector<1x4xf32>
    %105 = arith.negf %96 : vector<1x4xf32>
    %106 = math.exp %105 : vector<1x4xf32>
    %cst_15 = arith.constant 1.000000e+00 : f32
    %107 = vector.broadcast %cst_15 : f32 to vector<1x4xf32>
    %108 = arith.addf %107, %106 : vector<1x4xf32>
    %109 = arith.divf %107, %108 : vector<1x4xf32>
    %110 = arith.mulf %109, %78 : vector<1x4xf32>
    %111 = arith.negf %92 : vector<1x4xf32>
    %112 = math.exp %111 : vector<1x4xf32>
    %cst_16 = arith.constant 1.000000e+00 : f32
    %113 = vector.broadcast %cst_16 : f32 to vector<1x4xf32>
    %114 = arith.addf %113, %112 : vector<1x4xf32>
    %115 = arith.divf %113, %114 : vector<1x4xf32>
    %116 = math.tanh %100 : vector<1x4xf32>
    %117 = arith.mulf %115, %116 : vector<1x4xf32>
    %118 = arith.addf %110, %117 : vector<1x4xf32>
    %119 = arith.negf %104 : vector<1x4xf32>
    %120 = math.exp %119 : vector<1x4xf32>
    %cst_17 = arith.constant 1.000000e+00 : f32
    %121 = vector.broadcast %cst_17 : f32 to vector<1x4xf32>
    %122 = arith.addf %121, %120 : vector<1x4xf32>
    %123 = arith.divf %121, %122 : vector<1x4xf32>
    %124 = math.tanh %118 : vector<1x4xf32>
    %125 = arith.mulf %123, %124 : vector<1x4xf32>
    %126 = vector.extract_strided_slice %88 {offsets = [4, 0], sizes = [1, 4], strides = [1, 1]} : vector<8x4xf32> to vector<1x4xf32>
    %127 = vector.broadcast %3 : f32 to vector<1x4xf32>
    %128 = arith.mulf %127, %125 : vector<1x4xf32>
    %129 = arith.addf %126, %128 : vector<1x4xf32>
    %130 = vector.extract_strided_slice %88 {offsets = [5, 0], sizes = [1, 4], strides = [1, 1]} : vector<8x4xf32> to vector<1x4xf32>
    %131 = vector.broadcast %4 : f32 to vector<1x4xf32>
    %132 = arith.mulf %131, %125 : vector<1x4xf32>
    %133 = arith.addf %130, %132 : vector<1x4xf32>
    %134 = vector.extract_strided_slice %88 {offsets = [6, 0], sizes = [1, 4], strides = [1, 1]} : vector<8x4xf32> to vector<1x4xf32>
    %135 = vector.broadcast %5 : f32 to vector<1x4xf32>
    %136 = arith.mulf %135, %125 : vector<1x4xf32>
    %137 = arith.addf %134, %136 : vector<1x4xf32>
    %138 = vector.extract_strided_slice %88 {offsets = [7, 0], sizes = [1, 4], strides = [1, 1]} : vector<8x4xf32> to vector<1x4xf32>
    %139 = vector.broadcast %6 : f32 to vector<1x4xf32>
    %140 = arith.mulf %139, %125 : vector<1x4xf32>
    %141 = arith.addf %138, %140 : vector<1x4xf32>
    %142 = arith.negf %133 : vector<1x4xf32>
    %143 = math.exp %142 : vector<1x4xf32>
    %cst_18 = arith.constant 1.000000e+00 : f32
    %144 = vector.broadcast %cst_18 : f32 to vector<1x4xf32>
    %145 = arith.addf %144, %143 : vector<1x4xf32>
    %146 = arith.divf %144, %145 : vector<1x4xf32>
    %147 = arith.mulf %146, %118 : vector<1x4xf32>
    %148 = arith.negf %129 : vector<1x4xf32>
    %149 = math.exp %148 : vector<1x4xf32>
    %cst_19 = arith.constant 1.000000e+00 : f32
    %150 = vector.broadcast %cst_19 : f32 to vector<1x4xf32>
    %151 = arith.addf %150, %149 : vector<1x4xf32>
    %152 = arith.divf %150, %151 : vector<1x4xf32>
    %153 = math.tanh %137 : vector<1x4xf32>
    %154 = arith.mulf %152, %153 : vector<1x4xf32>
    %155 = arith.addf %147, %154 : vector<1x4xf32>
    %156 = arith.negf %141 : vector<1x4xf32>
    %157 = math.exp %156 : vector<1x4xf32>
    %cst_20 = arith.constant 1.000000e+00 : f32
    %158 = vector.broadcast %cst_20 : f32 to vector<1x4xf32>
    %159 = arith.addf %158, %157 : vector<1x4xf32>
    %160 = arith.divf %158, %159 : vector<1x4xf32>
    %161 = math.tanh %155 : vector<1x4xf32>
    %162 = arith.mulf %160, %161 : vector<1x4xf32>
    %c2_i32 = arith.constant 2 : i32
    %163 = arith.index_cast %c2_i32 : i32 to index
    %c0_21 = arith.constant 0 : index
    %c0_22 = arith.constant 0 : index
    %164 = vector.load %arg1[%163, %c0_21, %c0_22] : memref<4x8x4xf32, #tpu.memory_space<vmem>>, vector<1x8x4xf32>
    %165 = vector.shape_cast %164 : vector<1x8x4xf32> to vector<8x4xf32>
    %166 = vector.extract_strided_slice %165 {offsets = [0, 0], sizes = [1, 4], strides = [1, 1]} : vector<8x4xf32> to vector<1x4xf32>
    %167 = vector.broadcast %3 : f32 to vector<1x4xf32>
    %168 = arith.mulf %167, %162 : vector<1x4xf32>
    %169 = arith.addf %166, %168 : vector<1x4xf32>
    %170 = vector.extract_strided_slice %165 {offsets = [1, 0], sizes = [1, 4], strides = [1, 1]} : vector<8x4xf32> to vector<1x4xf32>
    %171 = vector.broadcast %4 : f32 to vector<1x4xf32>
    %172 = arith.mulf %171, %162 : vector<1x4xf32>
    %173 = arith.addf %170, %172 : vector<1x4xf32>
    %174 = vector.extract_strided_slice %165 {offsets = [2, 0], sizes = [1, 4], strides = [1, 1]} : vector<8x4xf32> to vector<1x4xf32>
    %175 = vector.broadcast %5 : f32 to vector<1x4xf32>
    %176 = arith.mulf %175, %162 : vector<1x4xf32>
    %177 = arith.addf %174, %176 : vector<1x4xf32>
    %178 = vector.extract_strided_slice %165 {offsets = [3, 0], sizes = [1, 4], strides = [1, 1]} : vector<8x4xf32> to vector<1x4xf32>
    %179 = vector.broadcast %6 : f32 to vector<1x4xf32>
    %180 = arith.mulf %179, %162 : vector<1x4xf32>
    %181 = arith.addf %178, %180 : vector<1x4xf32>
    %182 = arith.negf %173 : vector<1x4xf32>
    %183 = math.exp %182 : vector<1x4xf32>
    %cst_23 = arith.constant 1.000000e+00 : f32
    %184 = vector.broadcast %cst_23 : f32 to vector<1x4xf32>
    %185 = arith.addf %184, %183 : vector<1x4xf32>
    %186 = arith.divf %184, %185 : vector<1x4xf32>
    %187 = arith.mulf %186, %155 : vector<1x4xf32>
    %188 = arith.negf %169 : vector<1x4xf32>
    %189 = math.exp %188 : vector<1x4xf32>
    %cst_24 = arith.constant 1.000000e+00 : f32
    %190 = vector.broadcast %cst_24 : f32 to vector<1x4xf32>
    %191 = arith.addf %190, %189 : vector<1x4xf32>
    %192 = arith.divf %190, %191 : vector<1x4xf32>
    %193 = math.tanh %177 : vector<1x4xf32>
    %194 = arith.mulf %192, %193 : vector<1x4xf32>
    %195 = arith.addf %187, %194 : vector<1x4xf32>
    %196 = arith.negf %181 : vector<1x4xf32>
    %197 = math.exp %196 : vector<1x4xf32>
    %cst_25 = arith.constant 1.000000e+00 : f32
    %198 = vector.broadcast %cst_25 : f32 to vector<1x4xf32>
    %199 = arith.addf %198, %197 : vector<1x4xf32>
    %200 = arith.divf %198, %199 : vector<1x4xf32>
    %201 = math.tanh %195 : vector<1x4xf32>
    %202 = arith.mulf %200, %201 : vector<1x4xf32>
    %203 = vector.extract_strided_slice %165 {offsets = [4, 0], sizes = [1, 4], strides = [1, 1]} : vector<8x4xf32> to vector<1x4xf32>
    %204 = vector.broadcast %3 : f32 to vector<1x4xf32>
    %205 = arith.mulf %204, %202 : vector<1x4xf32>
    %206 = arith.addf %203, %205 : vector<1x4xf32>
    %207 = vector.extract_strided_slice %165 {offsets = [5, 0], sizes = [1, 4], strides = [1, 1]} : vector<8x4xf32> to vector<1x4xf32>
    %208 = vector.broadcast %4 : f32 to vector<1x4xf32>
    %209 = arith.mulf %208, %202 : vector<1x4xf32>
    %210 = arith.addf %207, %209 : vector<1x4xf32>
    %211 = vector.extract_strided_slice %165 {offsets = [6, 0], sizes = [1, 4], strides = [1, 1]} : vector<8x4xf32> to vector<1x4xf32>
    %212 = vector.broadcast %5 : f32 to vector<1x4xf32>
    %213 = arith.mulf %212, %202 : vector<1x4xf32>
    %214 = arith.addf %211, %213 : vector<1x4xf32>
    %215 = vector.extract_strided_slice %165 {offsets = [7, 0], sizes = [1, 4], strides = [1, 1]} : vector<8x4xf32> to vector<1x4xf32>
    %216 = vector.broadcast %6 : f32 to vector<1x4xf32>
    %217 = arith.mulf %216, %202 : vector<1x4xf32>
    %218 = arith.addf %215, %217 : vector<1x4xf32>
    %219 = arith.negf %210 : vector<1x4xf32>
    %220 = math.exp %219 : vector<1x4xf32>
    %cst_26 = arith.constant 1.000000e+00 : f32
    %221 = vector.broadcast %cst_26 : f32 to vector<1x4xf32>
    %222 = arith.addf %221, %220 : vector<1x4xf32>
    %223 = arith.divf %221, %222 : vector<1x4xf32>
    %224 = arith.mulf %223, %195 : vector<1x4xf32>
    %225 = arith.negf %206 : vector<1x4xf32>
    %226 = math.exp %225 : vector<1x4xf32>
    %cst_27 = arith.constant 1.000000e+00 : f32
    %227 = vector.broadcast %cst_27 : f32 to vector<1x4xf32>
    %228 = arith.addf %227, %226 : vector<1x4xf32>
    %229 = arith.divf %227, %228 : vector<1x4xf32>
    %230 = math.tanh %214 : vector<1x4xf32>
    %231 = arith.mulf %229, %230 : vector<1x4xf32>
    %232 = arith.addf %224, %231 : vector<1x4xf32>
    %233 = arith.negf %218 : vector<1x4xf32>
    %234 = math.exp %233 : vector<1x4xf32>
    %cst_28 = arith.constant 1.000000e+00 : f32
    %235 = vector.broadcast %cst_28 : f32 to vector<1x4xf32>
    %236 = arith.addf %235, %234 : vector<1x4xf32>
    %237 = arith.divf %235, %236 : vector<1x4xf32>
    %238 = math.tanh %232 : vector<1x4xf32>
    %239 = arith.mulf %237, %238 : vector<1x4xf32>
    %c3_i32 = arith.constant 3 : i32
    %240 = arith.index_cast %c3_i32 : i32 to index
    %c0_29 = arith.constant 0 : index
    %c0_30 = arith.constant 0 : index
    %241 = vector.load %arg1[%240, %c0_29, %c0_30] : memref<4x8x4xf32, #tpu.memory_space<vmem>>, vector<1x8x4xf32>
    %242 = vector.shape_cast %241 : vector<1x8x4xf32> to vector<8x4xf32>
    %243 = vector.extract_strided_slice %242 {offsets = [0, 0], sizes = [1, 4], strides = [1, 1]} : vector<8x4xf32> to vector<1x4xf32>
    %244 = vector.broadcast %3 : f32 to vector<1x4xf32>
    %245 = arith.mulf %244, %239 : vector<1x4xf32>
    %246 = arith.addf %243, %245 : vector<1x4xf32>
    %247 = vector.extract_strided_slice %242 {offsets = [1, 0], sizes = [1, 4], strides = [1, 1]} : vector<8x4xf32> to vector<1x4xf32>
    %248 = vector.broadcast %4 : f32 to vector<1x4xf32>
    %249 = arith.mulf %248, %239 : vector<1x4xf32>
    %250 = arith.addf %247, %249 : vector<1x4xf32>
    %251 = vector.extract_strided_slice %242 {offsets = [2, 0], sizes = [1, 4], strides = [1, 1]} : vector<8x4xf32> to vector<1x4xf32>
    %252 = vector.broadcast %5 : f32 to vector<1x4xf32>
    %253 = arith.mulf %252, %239 : vector<1x4xf32>
    %254 = arith.addf %251, %253 : vector<1x4xf32>
    %255 = vector.extract_strided_slice %242 {offsets = [3, 0], sizes = [1, 4], strides = [1, 1]} : vector<8x4xf32> to vector<1x4xf32>
    %256 = vector.broadcast %6 : f32 to vector<1x4xf32>
    %257 = arith.mulf %256, %239 : vector<1x4xf32>
    %258 = arith.addf %255, %257 : vector<1x4xf32>
    %259 = arith.negf %250 : vector<1x4xf32>
    %260 = math.exp %259 : vector<1x4xf32>
    %cst_31 = arith.constant 1.000000e+00 : f32
    %261 = vector.broadcast %cst_31 : f32 to vector<1x4xf32>
    %262 = arith.addf %261, %260 : vector<1x4xf32>
    %263 = arith.divf %261, %262 : vector<1x4xf32>
    %264 = arith.mulf %263, %232 : vector<1x4xf32>
    %265 = arith.negf %246 : vector<1x4xf32>
    %266 = math.exp %265 : vector<1x4xf32>
    %cst_32 = arith.constant 1.000000e+00 : f32
    %267 = vector.broadcast %cst_32 : f32 to vector<1x4xf32>
    %268 = arith.addf %267, %266 : vector<1x4xf32>
    %269 = arith.divf %267, %268 : vector<1x4xf32>
    %270 = math.tanh %254 : vector<1x4xf32>
    %271 = arith.mulf %269, %270 : vector<1x4xf32>
    %272 = arith.addf %264, %271 : vector<1x4xf32>
    %273 = arith.negf %258 : vector<1x4xf32>
    %274 = math.exp %273 : vector<1x4xf32>
    %cst_33 = arith.constant 1.000000e+00 : f32
    %275 = vector.broadcast %cst_33 : f32 to vector<1x4xf32>
    %276 = arith.addf %275, %274 : vector<1x4xf32>
    %277 = arith.divf %275, %276 : vector<1x4xf32>
    %278 = math.tanh %272 : vector<1x4xf32>
    %279 = arith.mulf %277, %278 : vector<1x4xf32>
    %280 = vector.extract_strided_slice %242 {offsets = [4, 0], sizes = [1, 4], strides = [1, 1]} : vector<8x4xf32> to vector<1x4xf32>
    %281 = vector.broadcast %3 : f32 to vector<1x4xf32>
    %282 = arith.mulf %281, %279 : vector<1x4xf32>
    %283 = arith.addf %280, %282 : vector<1x4xf32>
    %284 = vector.extract_strided_slice %242 {offsets = [5, 0], sizes = [1, 4], strides = [1, 1]} : vector<8x4xf32> to vector<1x4xf32>
    %285 = vector.broadcast %4 : f32 to vector<1x4xf32>
    %286 = arith.mulf %285, %279 : vector<1x4xf32>
    %287 = arith.addf %284, %286 : vector<1x4xf32>
    %288 = vector.extract_strided_slice %242 {offsets = [6, 0], sizes = [1, 4], strides = [1, 1]} : vector<8x4xf32> to vector<1x4xf32>
    %289 = vector.broadcast %5 : f32 to vector<1x4xf32>
    %290 = arith.mulf %289, %279 : vector<1x4xf32>
    %291 = arith.addf %288, %290 : vector<1x4xf32>
    %292 = vector.extract_strided_slice %242 {offsets = [7, 0], sizes = [1, 4], strides = [1, 1]} : vector<8x4xf32> to vector<1x4xf32>
    %293 = vector.broadcast %6 : f32 to vector<1x4xf32>
    %294 = arith.mulf %293, %279 : vector<1x4xf32>
    %295 = arith.addf %292, %294 : vector<1x4xf32>
    %296 = arith.negf %287 : vector<1x4xf32>
    %297 = math.exp %296 : vector<1x4xf32>
    %cst_34 = arith.constant 1.000000e+00 : f32
    %298 = vector.broadcast %cst_34 : f32 to vector<1x4xf32>
    %299 = arith.addf %298, %297 : vector<1x4xf32>
    %300 = arith.divf %298, %299 : vector<1x4xf32>
    %301 = arith.mulf %300, %272 : vector<1x4xf32>
    %302 = arith.negf %283 : vector<1x4xf32>
    %303 = math.exp %302 : vector<1x4xf32>
    %cst_35 = arith.constant 1.000000e+00 : f32
    %304 = vector.broadcast %cst_35 : f32 to vector<1x4xf32>
    %305 = arith.addf %304, %303 : vector<1x4xf32>
    %306 = arith.divf %304, %305 : vector<1x4xf32>
    %307 = math.tanh %291 : vector<1x4xf32>
    %308 = arith.mulf %306, %307 : vector<1x4xf32>
    %309 = arith.addf %301, %308 : vector<1x4xf32>
    %310 = arith.negf %295 : vector<1x4xf32>
    %311 = math.exp %310 : vector<1x4xf32>
    %cst_36 = arith.constant 1.000000e+00 : f32
    %312 = vector.broadcast %cst_36 : f32 to vector<1x4xf32>
    %313 = arith.addf %312, %311 : vector<1x4xf32>
    %314 = arith.divf %312, %313 : vector<1x4xf32>
    %315 = math.tanh %309 : vector<1x4xf32>
    %316 = arith.mulf %314, %315 : vector<1x4xf32>
    %c4_i32 = arith.constant 4 : i32
    %c0_37 = arith.constant 0 : index
    %c0_38 = arith.constant 0 : index
    %317 = vector.load %arg5[%c0_37, %c0_38] : memref<1x4xf32, #tpu.memory_space<vmem>>, vector<1x4xf32>
    tpu.vector_store %arg5[%c0_37, %c0_38], %316 {strides = array<i32>} : memref<1x4xf32, #tpu.memory_space<vmem>>, vector<1x4xf32>,
    %c0_39 = arith.constant 0 : index
    %c0_40 = arith.constant 0 : index
    %318 = vector.load %arg6[%c0_39, %c0_40] : memref<1x4xf32, #tpu.memory_space<vmem>>, vector<1x4xf32>
    tpu.vector_store %arg6[%c0_39, %c0_40], %309 {strides = array<i32>} : memref<1x4xf32, #tpu.memory_space<vmem>>, vector<1x4xf32>,
    %c0_i32_41 = arith.constant 0 : i32
    %319 = arith.cmpi eq, %arg0, %c0_i32_41 : i32
    %320 = arith.extui %319 : i1 to i32
    %c0_i32_42 = arith.constant 0 : i32
    %321 = arith.cmpi ne, %320, %c0_i32_42 : i32
    scf.if %321 {
      %c0_43 = arith.constant 0 : index
      %322 = memref.load %arg3[%c0_43] : memref<1xf32, #tpu.memory_space<smem>>
      %323 = vector.broadcast %322 : f32 to vector<1x4xf32>
      %324 = arith.mulf %316, %323 : vector<1x4xf32>
      %c0_44 = arith.constant 0 : index
      %c0_45 = arith.constant 0 : index
      %325 = vector.load %arg4[%c0_44, %c0_45] : memref<1x4xf32, #tpu.memory_space<vmem>>, vector<1x4xf32>
      tpu.vector_store %arg4[%c0_44, %c0_45], %324 {strides = array<i32>} : memref<1x4xf32, #tpu.memory_space<vmem>>, vector<1x4xf32>,
    } else {
    }
    return
  }
  func.func @transform_0(%arg0: i32) -> (i32, i32, i32) {
    %c0_i32 = arith.constant 0 : i32
    %c0_i32_0 = arith.constant 0 : i32
    %c0_i32_1 = arith.constant 0 : i32
    return %arg0, %c0_i32, %c0_i32_0 : i32, i32, i32
  }
  func.func @transform_1(%arg0: i32) -> i32 {
    %c0_i32 = arith.constant 0 : i32
    %c0_i32_0 = arith.constant 0 : i32
    return %c0_i32 : i32
  }
  func.func @transform_2(%arg0: i32) -> i32 {
    %c0_i32 = arith.constant 0 : i32
    %c0_i32_0 = arith.constant 0 : i32
    return %c0_i32 : i32
  }
  func.func @transform_3(%arg0: i32) -> (i32, i32) {
    %c0_i32 = arith.constant 0 : i32
    %c0_i32_0 = arith.constant 0 : i32
    %c0_i32_1 = arith.constant 0 : i32
    return %c0_i32, %c0_i32_0 : i32, i32
  }
}

</mosaic_0001>

<bundles_post_ra>
// kernel: tpu_custom_call.1
= control target key start
LH: loop header
LB: loop body
LE: loop exit
PB: predicated region body
PF: predicated region fallthrough
CT: control target
= control target key end

     0   :  { %9 = vsyncpa [#allocation7], 0  ;;  %s829_s0 = inlined_call_operand.vmem [shape: f32[4,8,4], index: 0, kind: input, shape index: {}]   ;;  %s830_s1 = inlined_call_operand.vmem [shape: f32[4], index: 1, kind: input, shape index: {}]   ;;  %s831_s2 = inlined_call_operand.<no memory space> [shape: f32[1], index: 2, kind: input, shape index: {}]   ;;  %s832_s3 = inlined_call_operand.hbm [shape: f32[1,4], index: 3, kind: output, shape index: {}]  }
   0x1   :  { %10 = vsyncpa [#allocation6], 0  ;;  %s19_s14 = sshll.u32 %s830_s1, 4  ;;  %s20_s14 = int_to_ptr.vmem [resolvable:$true] %s19_s14 }
   0x2   :  { %s698_s15 = scalar_lea.vmem %s20_s14, 16  ;;  %p703_p1 = scmp.lt.s32.totalorder %s20_s14, %s20_s14 }
   0x3   :  { %p699_p0 = scmp.ne.s32.totalorder %s20_s14, %s698_s15  ;;  %p704_p2 = scmp.lt.s32.totalorder %s698_s15, %s698_s15 }
   0x5   :  { %p705_p3 = por %p704_p2, %p703_p1 }
   0x7   :  { %p706_p4 = pnand %p705_p3, %p699_p0 }
   0x9   :  { %709 = shalt.err (!%p706_p4)
}
   0xa   :  { %s736_s16 = smov [#allocation5]  }
   0xb   :  { %22 = dma.vmem_to_smem %s20_s14, 16, %s736_s16, [#allocation7]  }
   0xc   :  { %732 = dma.done.wait [#allocation7], 16  }
   0xd   :  { %733 = vsyncadd [#allocation7], 4294967280 }
   0xe   :  { %28 = sfence }
   0xf   :  { %vm33_vm0 = vcmask 24576   ;;  %s36_s17 = sld [smem:[#allocation5]]  ;;  %s536_s18 = sld [smem:[#allocation5 + $0x1]]  ;;  %v49_v0 = vlaneseq  ;;  %v737_v1 = vmov 0.0   ;;  %v42_v7 = vld [vmem:[%s829_s0] sm:$0xff]  ;;  %vm512_vm1 = vcmask 29701  }
  0x10   :  { %34 = vst.msk [vmem:[#allocation2] sm:$0x1] %vm33_vm0, %v737_v1  ;;  %35 = vst.msk [vmem:[#allocation3] sm:$0x1] %vm33_vm0, %v737_v1  ;;  %s537_s1 = sld [smem:[#allocation5 + $0x2]]  ;;  %s538_s19 = sld [smem:[#allocation5 + $0x3]] }
  0x11   :  { %v50_v2 = vshrl.u32 %v49_v0, 7  ;;  %vm510_vm2 = vcmask 31751   ;;  %s738_s29 = smov [#allocation8]  }
  0x12   :  { %s527_s30 = sshll.u32 %s738_s29, 4  ;;  %s528_s30 = int_to_ptr.vmem [resolvable:$true] %s527_s30 }
  0x13   :  { %v51_v5 = vsub.s32 0, %v50_v2  ;;  %s710_s4 = scalar_lea.vmem %s528_s30, 16  ;;  %s714_s5 = scalar_lea.vmem %s528_s30, 32 }
  0x14   :  { %p711_p5 = scmp.ne.s32.totalorder %s528_s30, %s710_s4  ;;  %p715_p6 = scmp.lt.s32.totalorder %s528_s30, %s528_s30 }
  0x15   :  { %v762_v3 = vstv %s36_s17  ;;  %v764_v4 = vstv %s536_s18  ;;  %p716_p7 = scmp.lt.s32.totalorder %s714_s5, %s710_s4 }
  0x16   :  { %v771_v10 = vstv %s537_s1  ;;  %v773_v11 = vstv %s538_s19 }
  0x17   :  { %v40_v6 = vld [vmem:[#allocation2] sm:$0x1]  ;;  %v540_v31 = vld [vmem:[#allocation3] ss:$0 sm:$0xff]  ;;  %p717_p8 = por %p716_p7, %p715_p6 }
  0x18   :  { %v44_v8 = vmul.f32 %v762_v3, %v40_v6  ;;  %v47_v9 = vmul.f32 %v764_v4, %v40_v6  ;;  %v56_v14 = vmul.f32 %v771_v10, %v40_v6  ;;  %v65_v16 = vmul.f32 %v773_v11, %v40_v6 }
  0x19   :  { %p718_p9 = pnand %p717_p8, %p711_p5 }
  0x1a   :  { %v45_v12 = vadd.f32 %v44_v8, %v42_v7  ;;  %v52_v13 = vrot.slane %v47_v9, %v51_v5  ;;  %v61_v19 = vrot.slane %v56_v14, %v51_v5  ;;  %v70_v20 = vrot.slane %v65_v16, %v51_v5 }
  0x1c   :  { %v54_v15 = vadd.f32 %v52_v13, %v42_v7  ;;  %v541_v17 = vmul.f32 -1.442695, %v45_v12  ;;  %v63_v21 = vadd.f32 %v61_v19, %v42_v7  ;;  %v72_v22 = vadd.f32 %v70_v20, %v42_v7  ;;  %v546_v19 = vld [vmem:[%s829_s0 + $0x8] sm:$0xff] }
  0x1e   :  { %v539_v18 = vmul.f32 -1.442695, %v54_v15  ;;  %570 = vpow2.f32 %v541_v17  ;;  %v542_v24 = vmul.f32 -1.442695, %v72_v22 }
  0x20   :  { %572 = vpow2.f32 %v539_v18 }
  0x21   :  { %574 = vtanh.f32 %v63_v21 }
  0x28   :  { %v571_v23 = vpop.eup %570 }
  0x29   :  { %v89_v25 = vadd.f32 1.0, %v571_v23 }
  0x2a   :  { %v573_v26 = vpop.eup %572 }
  0x2b   :  { %v76_v27 = vadd.f32 1.0, %v573_v26  ;;  %576 = vrcp.f32 %v89_v25  ;;  %v575_v28 = vpop.eup %574 }
  0x2c   :  { %578 = vpow2.f32 %v542_v24  ;;  %v94_v29 = vrot.slane %v575_v28, 2 }
  0x2d   :  { %580 = vrcp.f32 %v76_v27 }
  0x35   :  { %v577_v30 = vpop.eup %576 }
  0x36   :  { %v579_v32 = vpop.eup %578  ;;  %v96_v33 = vmul.f32 %v577_v30, %v94_v29 }
  0x37   :  { %v581_v34 = vpop.eup %580  ;;  %v104_v38 = vadd.f32 1.0, %v579_v32 }
  0x38   :  { %v85_v35 = vmul.f32 %v581_v34, %v540_v31  ;;  %v98_v36 = vrot.slane %v96_v33, 7 }
  0x3a   :  { %v100_v37 = vadd.f32 %v98_v36, %v85_v35 }
  0x3c   :  { %582 = vtanh.f32 %v100_v37  ;;  %v139_v2 = vrot.slane %v100_v37, 4 }
  0x3d   :  { %584 = vrcp.f32 %v104_v38 }
  0x46   :  { %v583_v39 = vpop.eup %582 }
  0x47   :  { %v109_v40 = vrot.slane %v583_v39, 6  ;;  %v585_v41 = vpop.eup %584 }
  0x49   :  { %v111_v42 = vmul.f32 %v585_v41, %v109_v40 }
  0x4b   :  { %v112_v43 = vmul.f32 %v111_v42, %v762_v3  ;;  %v117_v44 = vmul.f32 %v111_v42, %v764_v4  ;;  %v122_v49 = vmul.f32 %v111_v42, %v771_v10  ;;  %v127_v52 = vmul.f32 %v111_v42, %v773_v11 }
  0x4d   :  { %v114_v45 = vrot.slane %v112_v43, 7  ;;  %v119_v46 = vrot.slane %v117_v44, 6  ;;  %v124_v53 = vrot.slane %v122_v49, 5  ;;  %v129_v54 = vrot.slane %v127_v52, 4 }
  0x4f   :  { %v116_v47 = vadd.f32 %v114_v45, %v42_v7  ;;  %v121_v48 = vadd.f32 %v119_v46, %v42_v7  ;;  %v126_v55 = vadd.f32 %v124_v53, %v42_v7  ;;  %v131_v56 = vadd.f32 %v129_v54, %v42_v7 }
  0x51   :  { %v543_v50 = vmul.f32 -1.442695, %v121_v48  ;;  %v544_v51 = vmul.f32 -1.442695, %v116_v47  ;;  %v545_v61 = vmul.f32 -1.442695, %v131_v56 }
  0x53   :  { %586 = vpow2.f32 %v543_v50 }
  0x54   :  { %588 = vpow2.f32 %v544_v51 }
  0x55   :  { %590 = vtanh.f32 %v126_v55 }
  0x5d   :  { %v587_v57 = vpop.eup %586 }
  0x5e   :  { %v589_v58 = vpop.eup %588  ;;  %v135_v59 = vadd.f32 1.0, %v587_v57 }
  0x5f   :  { %v145_v60 = vadd.f32 1.0, %v589_v58  ;;  %v591_v62 = vpop.eup %590 }
  0x60   :  { %592 = vrcp.f32 %v135_v59  ;;  %v150_v0 = vrot.slane %v591_v62, 2 }
  0x61   :  { %594 = vrcp.f32 %v145_v60 }
  0x62   :  { %596 = vpow2.f32 %v545_v61 }
  0x6a   :  { %v593_v63 = vpop.eup %592 }
  0x6b   :  { %v595_v1 = vpop.eup %594  ;;  %v141_v8 = vmul.f32 %v593_v63, %v139_v2 }
  0x6c   :  { %v152_v5 = vmul.f32 %v595_v1, %v150_v0  ;;  %v597_v6 = vpop.eup %596 }
  0x6d   :  { %v160_v7 = vadd.f32 1.0, %v597_v6 }
  0x6e   :  { %v154_v9 = vrot.slane %v152_v5, 7 }
  0x70   :  { %v156_v12 = vadd.f32 %v154_v9, %v141_v8 }
  0x72   :  { %598 = vtanh.f32 %v156_v12  ;;  %v197_v41 = vrot.slane %v156_v12, 4 }
  0x73   :  { %600 = vrcp.f32 %v160_v7 }
  0x7c   :  { %v599_v13 = vpop.eup %598 }
  0x7d   :  { %v165_v14 = vrot.slane %v599_v13, 6  ;;  %v601_v15 = vpop.eup %600 }
  0x7f   :  { %v167_v16 = vmul.f32 %v601_v15, %v165_v14 }
  0x81   :  { %v170_v17 = vmul.f32 %v167_v16, %v762_v3  ;;  %v175_v18 = vmul.f32 %v167_v16, %v764_v4  ;;  %v180_v24 = vmul.f32 %v167_v16, %v771_v10  ;;  %v185_v27 = vmul.f32 %v167_v16, %v773_v11 }
  0x83   :  { %v172_v20 = vrot.slane %v170_v17, 7  ;;  %v177_v21 = vrot.slane %v175_v18, 6  ;;  %v182_v28 = vrot.slane %v180_v24, 5  ;;  %v187_v29 = vrot.slane %v185_v27, 4 }
  0x85   :  { %v174_v22 = vadd.f32 %v546_v19, %v172_v20  ;;  %v179_v23 = vadd.f32 %v546_v19, %v177_v21  ;;  %v184_v30 = vadd.f32 %v546_v19, %v182_v28  ;;  %v189_v31 = vadd.f32 %v546_v19, %v187_v29  ;;  %v553_v28 = vld [vmem:[%s829_s0 + $0x10] sm:$0xff] }
  0x87   :  { %v547_v25 = vmul.f32 -1.442695, %v179_v23  ;;  %v548_v26 = vmul.f32 -1.442695, %v174_v22  ;;  %v549_v36 = vmul.f32 -1.442695, %v189_v31 }
  0x89   :  { %602 = vpow2.f32 %v547_v25 }
  0x8a   :  { %604 = vpow2.f32 %v548_v26 }
  0x8b   :  { %606 = vtanh.f32 %v184_v30 }
  0x93   :  { %v603_v32 = vpop.eup %602 }
  0x94   :  { %v605_v33 = vpop.eup %604  ;;  %v193_v34 = vadd.f32 1.0, %v603_v32 }
  0x95   :  { %v203_v35 = vadd.f32 1.0, %v605_v33  ;;  %v607_v37 = vpop.eup %606 }
  0x96   :  { %608 = vrcp.f32 %v193_v34  ;;  %v208_v39 = vrot.slane %v607_v37, 2 }
  0x97   :  { %610 = vrcp.f32 %v203_v35 }
  0x98   :  { %612 = vpow2.f32 %v549_v36 }
  0xa0   :  { %v609_v38 = vpop.eup %608 }
  0xa1   :  { %v611_v40 = vpop.eup %610  ;;  %v199_v44 = vmul.f32 %v609_v38, %v197_v41 }
  0xa2   :  { %v210_v42 = vmul.f32 %v611_v40, %v208_v39  ;;  %v613_v43 = vpop.eup %612 }
  0xa3   :  { %v218_v47 = vadd.f32 1.0, %v613_v43 }
  0xa4   :  { %v212_v45 = vrot.slane %v210_v42, 7 }
  0xa6   :  { %v214_v46 = vadd.f32 %v212_v45, %v199_v44 }
  0xa8   :  { %614 = vtanh.f32 %v214_v46  ;;  %v253_v15 = vrot.slane %v214_v46, 4 }
  0xa9   :  { %616 = vrcp.f32 %v218_v47 }
  0xb2   :  { %v615_v48 = vpop.eup %614 }
  0xb3   :  { %v223_v49 = vrot.slane %v615_v48, 6  ;;  %v617_v50 = vpop.eup %616 }
  0xb5   :  { %v225_v51 = vmul.f32 %v617_v50, %v223_v49 }
  0xb7   :  { %v226_v52 = vmul.f32 %v225_v51, %v762_v3  ;;  %v231_v53 = vmul.f32 %v225_v51, %v764_v4  ;;  %v236_v54 = vmul.f32 %v225_v51, %v771_v10  ;;  %v241_v55 = vmul.f32 %v225_v51, %v773_v11 }
  0xb9   :  { %v228_v56 = vrot.slane %v226_v52, 7  ;;  %v233_v57 = vrot.slane %v231_v53, 6  ;;  %v238_v58 = vrot.slane %v236_v54, 5  ;;  %v243_v59 = vrot.slane %v241_v55, 4 }
  0xbb   :  { %v230_v60 = vadd.f32 %v546_v19, %v228_v56  ;;  %v235_v61 = vadd.f32 %v546_v19, %v233_v57  ;;  %v240_v62 = vadd.f32 %v546_v19, %v238_v58  ;;  %v245_v63 = vadd.f32 %v546_v19, %v243_v59 }
  0xbd   :  { %v550_v0 = vmul.f32 -1.442695, %v235_v61  ;;  %v551_v1 = vmul.f32 -1.442695, %v230_v60  ;;  %v552_v9 = vmul.f32 -1.442695, %v245_v63 }
  0xbf   :  { %618 = vpow2.f32 %v550_v0 }
  0xc0   :  { %620 = vpow2.f32 %v551_v1 }
  0xc1   :  { %622 = vtanh.f32 %v240_v62 }
  0xc9   :  { %v619_v2 = vpop.eup %618 }
  0xca   :  { %v621_v5 = vpop.eup %620  ;;  %v249_v6 = vadd.f32 1.0, %v619_v2 }
  0xcb   :  { %v259_v8 = vadd.f32 1.0, %v621_v5  ;;  %v623_v12 = vpop.eup %622 }
  0xcc   :  { %624 = vrcp.f32 %v249_v6  ;;  %v264_v13 = vrot.slane %v623_v12, 2 }
  0xcd   :  { %626 = vrcp.f32 %v259_v8 }
  0xce   :  { %628 = vpow2.f32 %v552_v9 }
  0xd6   :  { %v625_v7 = vpop.eup %624 }
  0xd7   :  { %v627_v14 = vpop.eup %626  ;;  %v255_v18 = vmul.f32 %v625_v7, %v253_v15 }
  0xd8   :  { %v266_v16 = vmul.f32 %v627_v14, %v264_v13  ;;  %v629_v17 = vpop.eup %628 }
  0xd9   :  { %v274_v21 = vadd.f32 1.0, %v629_v17 }
  0xda   :  { %v268_v19 = vrot.slane %v266_v16, 7 }
  0xdc   :  { %v270_v20 = vadd.f32 %v268_v19, %v255_v18 }
  0xde   :  { %630 = vtanh.f32 %v270_v20  ;;  %v311_v47 = vrot.slane %v270_v20, 4 }
  0xdf   :  { %632 = vrcp.f32 %v274_v21 }
  0xe8   :  { %v631_v22 = vpop.eup %630 }
  0xe9   :  { %v279_v23 = vrot.slane %v631_v22, 6  ;;  %v633_v24 = vpop.eup %632 }
  0xeb   :  { %v281_v25 = vmul.f32 %v633_v24, %v279_v23 }
  0xed   :  { %v284_v26 = vmul.f32 %v281_v25, %v762_v3  ;;  %v289_v27 = vmul.f32 %v281_v25, %v764_v4  ;;  %v294_v33 = vmul.f32 %v281_v25, %v771_v10  ;;  %v299_v36 = vmul.f32 %v281_v25, %v773_v11 }
  0xef   :  { %v286_v29 = vrot.slane %v284_v26, 7  ;;  %v291_v30 = vrot.slane %v289_v27, 6  ;;  %v296_v37 = vrot.slane %v294_v33, 5  ;;  %v301_v38 = vrot.slane %v299_v36, 4 }
  0xf1   :  { %v288_v31 = vadd.f32 %v553_v28, %v286_v29  ;;  %v293_v32 = vadd.f32 %v553_v28, %v291_v30  ;;  %v298_v39 = vadd.f32 %v553_v28, %v296_v37  ;;  %v303_v40 = vadd.f32 %v553_v28, %v301_v38  ;;  %v560_v37 = vld [vmem:[%s829_s0 + $0x18] sm:$0xff] }
  0xf3   :  { %v554_v34 = vmul.f32 -1.442695, %v293_v32  ;;  %v555_v35 = vmul.f32 -1.442695, %v288_v31  ;;  %v556_v45 = vmul.f32 -1.442695, %v303_v40 }
  0xf5   :  { %634 = vpow2.f32 %v554_v34 }
  0xf6   :  { %636 = vpow2.f32 %v555_v35 }
  0xf7   :  { %638 = vtanh.f32 %v298_v39 }
  0xff   :  { %v635_v41 = vpop.eup %634 }
 0x100   :  { %v637_v42 = vpop.eup %636  ;;  %v307_v43 = vadd.f32 1.0, %v635_v41 }
 0x101   :  { %v317_v44 = vadd.f32 1.0, %v637_v42  ;;  %v639_v46 = vpop.eup %638 }
 0x102   :  { %640 = vrcp.f32 %v307_v43  ;;  %v322_v49 = vrot.slane %v639_v46, 2 }
 0x103   :  { %642 = vrcp.f32 %v317_v44 }
 0x104   :  { %644 = vpow2.f32 %v556_v45 }
 0x10c   :  { %v641_v48 = vpop.eup %640 }
 0x10d   :  { %v643_v50 = vpop.eup %642  ;;  %v313_v51 = vmul.f32 %v641_v48, %v311_v47 }
 0x10e   :  { %v324_v52 = vmul.f32 %v643_v50, %v322_v49  ;;  %v645_v53 = vpop.eup %644 }
 0x10f   :  { %v332_v56 = vadd.f32 1.0, %v645_v53 }
 0x110   :  { %v326_v54 = vrot.slane %v324_v52, 7 }
 0x112   :  { %v328_v55 = vadd.f32 %v326_v54, %v313_v51 }
 0x114   :  { %646 = vtanh.f32 %v328_v55  ;;  %v367_v21 = vrot.slane %v328_v55, 4 }
 0x115   :  { %648 = vrcp.f32 %v332_v56 }
 0x11e   :  { %v647_v57 = vpop.eup %646 }
 0x11f   :  { %v337_v58 = vrot.slane %v647_v57, 6  ;;  %v649_v59 = vpop.eup %648 }
 0x121   :  { %v339_v60 = vmul.f32 %v649_v59, %v337_v58 }
 0x123   :  { %v340_v61 = vmul.f32 %v339_v60, %v762_v3  ;;  %v345_v62 = vmul.f32 %v339_v60, %v764_v4  ;;  %v350_v63 = vmul.f32 %v339_v60, %v771_v10  ;;  %v355_v0 = vmul.f32 %v339_v60, %v773_v11 }
 0x125   :  { %v342_v1 = vrot.slane %v340_v61, 7  ;;  %v347_v2 = vrot.slane %v345_v62, 6  ;;  %v352_v5 = vrot.slane %v350_v63, 5  ;;  %v357_v6 = vrot.slane %v355_v0, 4 }
 0x127   :  { %v344_v8 = vadd.f32 %v553_v28, %v342_v1  ;;  %v349_v9 = vadd.f32 %v553_v28, %v347_v2  ;;  %v354_v12 = vadd.f32 %v553_v28, %v352_v5  ;;  %v359_v7 = vadd.f32 %v553_v28, %v357_v6 }
 0x129   :  { %v557_v13 = vmul.f32 -1.442695, %v349_v9  ;;  %v558_v14 = vmul.f32 -1.442695, %v344_v8  ;;  %v559_v19 = vmul.f32 -1.442695, %v359_v7 }
 0x12b   :  { %650 = vpow2.f32 %v557_v13 }
 0x12c   :  { %652 = vpow2.f32 %v558_v14 }
 0x12d   :  { %654 = vtanh.f32 %v354_v12 }
 0x135   :  { %v651_v15 = vpop.eup %650 }
 0x136   :  { %v653_v16 = vpop.eup %652  ;;  %v363_v17 = vadd.f32 1.0, %v651_v15 }
 0x137   :  { %v373_v18 = vadd.f32 1.0, %v653_v16  ;;  %v655_v20 = vpop.eup %654 }
 0x138   :  { %656 = vrcp.f32 %v363_v17  ;;  %v378_v23 = vrot.slane %v655_v20, 2 }
 0x139   :  { %658 = vrcp.f32 %v373_v18 }
 0x13a   :  { %660 = vpow2.f32 %v559_v19 }
 0x142   :  { %v657_v22 = vpop.eup %656 }
 0x143   :  { %v659_v24 = vpop.eup %658  ;;  %v369_v25 = vmul.f32 %v657_v22, %v367_v21 }
 0x144   :  { %v380_v26 = vmul.f32 %v659_v24, %v378_v23  ;;  %v661_v27 = vpop.eup %660 }
 0x145   :  { %v388_v30 = vadd.f32 1.0, %v661_v27 }
 0x146   :  { %v382_v28 = vrot.slane %v380_v26, 7 }
 0x148   :  { %v384_v29 = vadd.f32 %v382_v28, %v369_v25 }
 0x14a   :  { %662 = vtanh.f32 %v384_v29  ;;  %v425_v56 = vrot.slane %v384_v29, 4 }
 0x14b   :  { %664 = vrcp.f32 %v388_v30 }
 0x154   :  { %v663_v31 = vpop.eup %662 }
 0x155   :  { %v393_v32 = vrot.slane %v663_v31, 6  ;;  %v665_v33 = vpop.eup %664 }
 0x157   :  { %v395_v34 = vmul.f32 %v665_v33, %v393_v32 }
 0x159   :  { %v398_v35 = vmul.f32 %v395_v34, %v762_v3  ;;  %v403_v36 = vmul.f32 %v395_v34, %v764_v4  ;;  %v408_v42 = vmul.f32 %v395_v34, %v771_v10  ;;  %v413_v45 = vmul.f32 %v395_v34, %v773_v11 }
 0x15b   :  { %v400_v38 = vrot.slane %v398_v35, 7  ;;  %v405_v39 = vrot.slane %v403_v36, 6  ;;  %v410_v46 = vrot.slane %v408_v42, 5  ;;  %v415_v47 = vrot.slane %v413_v45, 4 }
 0x15d   :  { %v402_v40 = vadd.f32 %v560_v37, %v400_v38  ;;  %v407_v41 = vadd.f32 %v560_v37, %v405_v39  ;;  %v412_v48 = vadd.f32 %v560_v37, %v410_v46  ;;  %v417_v49 = vadd.f32 %v560_v37, %v415_v47 }
 0x15e   :  { %v518_v39 = vstv %s831_s2 }
 0x15f   :  { %v561_v43 = vmul.f32 -1.442695, %v407_v41  ;;  %v562_v44 = vmul.f32 -1.442695, %v402_v40  ;;  %v563_v54 = vmul.f32 -1.442695, %v417_v49 }
 0x161   :  { %666 = vpow2.f32 %v561_v43 }
 0x162   :  { %668 = vpow2.f32 %v562_v44 }
 0x163   :  { %670 = vtanh.f32 %v412_v48 }
 0x16b   :  { %v667_v50 = vpop.eup %666 }
 0x16c   :  { %v669_v51 = vpop.eup %668  ;;  %v421_v52 = vadd.f32 1.0, %v667_v50 }
 0x16d   :  { %v431_v53 = vadd.f32 1.0, %v669_v51  ;;  %v671_v55 = vpop.eup %670 }
 0x16e   :  { %672 = vrcp.f32 %v421_v52  ;;  %v436_v58 = vrot.slane %v671_v55, 2 }
 0x16f   :  { %674 = vrcp.f32 %v431_v53 }
 0x170   :  { %676 = vpow2.f32 %v563_v54 }
 0x178   :  { %v673_v57 = vpop.eup %672 }
 0x179   :  { %v675_v59 = vpop.eup %674  ;;  %v427_v60 = vmul.f32 %v673_v57, %v425_v56 }
 0x17a   :  { %v438_v61 = vmul.f32 %v675_v59, %v436_v58  ;;  %v677_v62 = vpop.eup %676 }
 0x17b   :  { %v446_v1 = vadd.f32 1.0, %v677_v62 }
 0x17c   :  { %v440_v63 = vrot.slane %v438_v61, 7 }
 0x17e   :  { %v442_v0 = vadd.f32 %v440_v63, %v427_v60 }
 0x180   :  { %678 = vtanh.f32 %v442_v0  ;;  %v481_v26 = vrot.slane %v442_v0, 4 }
 0x181   :  { %680 = vrcp.f32 %v446_v1 }
 0x18a   :  { %v679_v2 = vpop.eup %678 }
 0x18b   :  { %v451_v5 = vrot.slane %v679_v2, 6  ;;  %v681_v6 = vpop.eup %680 }
 0x18d   :  { %v453_v8 = vmul.f32 %v681_v6, %v451_v5 }
 0x18f   :  { %v454_v9 = vmul.f32 %v453_v8, %v762_v3  ;;  %v459_v12 = vmul.f32 %v453_v8, %v764_v4  ;;  %v464_v7 = vmul.f32 %v453_v8, %v771_v10  ;;  %v469_v13 = vmul.f32 %v453_v8, %v773_v11 }
 0x191   :  { %v456_v14 = vrot.slane %v454_v9, 7  ;;  %v461_v15 = vrot.slane %v459_v12, 6  ;;  %v466_v16 = vrot.slane %v464_v7, 5  ;;  %v471_v17 = vrot.slane %v469_v13, 4 }
 0x193   :  { %v458_v18 = vadd.f32 %v560_v37, %v456_v14  ;;  %v463_v19 = vadd.f32 %v560_v37, %v461_v15  ;;  %v468_v20 = vadd.f32 %v560_v37, %v466_v16  ;;  %v473_v21 = vadd.f32 %v560_v37, %v471_v17 }
 0x195   :  { %v564_v22 = vmul.f32 -1.442695, %v463_v19  ;;  %v565_v23 = vmul.f32 -1.442695, %v458_v18  ;;  %v566_v10 = vmul.f32 -1.442695, %v473_v21 }
 0x197   :  { %682 = vpow2.f32 %v564_v22 }
 0x198   :  { %684 = vpow2.f32 %v565_v23 }
 0x199   :  { %686 = vtanh.f32 %v468_v20 }
 0x1a1   :  { %v683_v24 = vpop.eup %682 }
 0x1a2   :  { %v685_v3 = vpop.eup %684  ;;  %v477_v4 = vadd.f32 1.0, %v683_v24 }
 0x1a3   :  { %v487_v25 = vadd.f32 1.0, %v685_v3  ;;  %v687_v11 = vpop.eup %686 }
 0x1a4   :  { %688 = vrcp.f32 %v477_v4  ;;  %v492_v28 = vrot.slane %v687_v11, 2 }
 0x1a5   :  { %690 = vrcp.f32 %v487_v25 }
 0x1a6   :  { %692 = vpow2.f32 %v566_v10 }
 0x1ae   :  { %v689_v27 = vpop.eup %688 }
 0x1af   :  { %v691_v29 = vpop.eup %690  ;;  %v483_v30 = vmul.f32 %v689_v27, %v481_v26 }
 0x1b0   :  { %v494_v31 = vmul.f32 %v691_v29, %v492_v28  ;;  %v693_v32 = vpop.eup %692 }
 0x1b1   :  { %v502_v35 = vadd.f32 1.0, %v693_v32 }
 0x1b2   :  { %v496_v33 = vrot.slane %v494_v31, 7 }
 0x1b4   :  { %v498_v34 = vadd.f32 %v496_v33, %v483_v30 }
 0x1b6   :  { %694 = vtanh.f32 %v498_v34  ;;  %513 = vst.msk [vmem:[#allocation3 - $0x5] sm:$0x20] %vm512_vm1, %v498_v34 }
 0x1b7   :  { %696 = vrcp.f32 %v502_v35 }
 0x1c0   :  { %v695_v36 = vpop.eup %694 }
 0x1c1   :  { %v507_v37 = vrot.slane %v695_v36, 6  ;;  %v697_v38 = vpop.eup %696 }
 0x1c3   :  { %v509_v40 = vmul.f32 %v697_v38, %v507_v37 }
 0x1c5   :  { %511 = vst.msk [vmem:[#allocation2 - $0x7] sm:$0x80] %vm510_vm2, %v509_v40  ;;  %v519_v41 = vmul.f32 %v518_v39, %v509_v40 }
 0x1c7   :  { %520 = vst.msk [vmem:[#allocation8 - $0x7] sm:$0x80] %vm510_vm2, %v519_v41 }
 0x1c8   :  { %721 = shalt.err (!%p718_p9)
}
 0x1c9   :  { %s722_s8 = scalar_lea.hbm %s832_s3, 16 }
 0x1ca   :  { %p723_p10 = scmp.ne.s32.totalorder %s832_s3, %s722_s8  ;;  %p726_p11 = scmp.lt.u32.totalorder %s722_s8, %s832_s3 }
 0x1cc   :  { %p728_p12 = pnand %p726_p11, %p723_p10 }
 0x1ce   :  { %731 = shalt.err (!%p728_p12)
}
 0x1cf   :  { %530 = dma.vmem_to_hbm [thread:$0]  %s528_s30, 16, %s832_s3, [#allocation6]  }
 0x1d0   :  { %734 = dma.done.wait [#allocation6], 16  }
 0x1d1   :  { %735 = vsyncadd [#allocation6], 4294967280 }
 0x1d2   :  { %534 = vsyncpa [#allocation6], 1 }
 0x1d3   :  { %535 = vsyncpa [#allocation7], 1 }

</bundles_post_ra>
